<compile_context>
chip_gen: v5e
topology: v5e:2x2
jax: 0.10.0
libtpu: 0.0.40
codegen_flags: <defaults>
</compile_context>

<pallas_src>
import functools
import math

import jax
import jax.numpy as jnp
from jax.experimental import pallas as pl
from jax.experimental.pallas import tpu as pltpu


_TILE_BYTES = 4 * 1024 * 1024      # ~4 MiB output tile (8 MiB double-buffered)
_TM_SEED = 1024                    # initial sublane-tile cap (multiple of 8)
_MEGACORE_SPLIT_ELEMS = 1 << 19    # split a (1,1) grid above this many elements
_SMALL_ELEMS = 1 << 15             # below this, XLA fusion beats launch overhead
                                   # (crossover is ~2x higher on v7x's 3.2 TB/s)


def _round_up(x: int, m: int) -> int:
    return ((x + m - 1) // m) * m


def _cdiv(x: int, m: int) -> int:
    return (x + m - 1) // m


def _pick_tiles(rows: int, cols: int, itemsize: int):
    """Pick a (tm, tn) tile: lane/sublane legal, ~_TILE_BYTES of output VMEM."""
    tile_elems = max(1, _TILE_BYTES // itemsize)
    tm = rows if rows <= _TM_SEED else _TM_SEED
    # Lane tile from the budget (account for (8,128) sublane padding in VMEM).
    budget_lanes = max(128, (tile_elems // _round_up(tm, 8)) // 128 * 128)
    tn = cols if cols <= budget_lanes else budget_lanes
    if tn == cols:
        # Lane dim under-uses the budget -> let the sublane tile grow.
        budget_rows = max(8, (tile_elems // _round_up(tn, 128)) // 8 * 8)
        tm = rows if rows <= budget_rows else budget_rows
    # Megacore (v7x has 2 TCs): if the grid collapsed to a single step but the
    # output is large, split one axis so both cores get work.
    if (_cdiv(rows, tm) * _cdiv(cols, tn) == 1
            and rows * cols >= _MEGACORE_SPLIT_ELEMS):
        if rows >= 16:
            tm = _round_up(_cdiv(rows, 2), 8)
        elif cols > 256:
            tn = _round_up(_cdiv(cols, 2), 128)
    return tm, tn


def _cast_arange(ar_f32, ar_dtype, out_dtype):
    """Trace-time-gated dtype round trip (only emitted when it changes values)."""
    ar_dtype = jnp.dtype(ar_dtype)
    out_dtype = jnp.dtype(out_dtype)
    if ar_dtype != jnp.dtype(jnp.float32):
        ar_f32 = ar_f32.astype(ar_dtype)      # torch rounds arange to its dtype first
    if ar_f32.dtype != out_dtype:
        ar_f32 = ar_f32.astype(out_dtype)
    return ar_f32


def _arange_bcast_kernel(x_ref, o_ref, *, start, step, ar_dtype, out_dtype):
    """out[r, c] = x[r, 0] + arange[j*tn + c]  (x (tm,1) broadcast across columns)."""
    j = pl.program_id(1)
    tn = o_ref.shape[1]
    col = jax.lax.broadcasted_iota(jnp.int32, (1, tn), 1) + j * tn
    ar = col.astype(jnp.float32) * jnp.float32(step) + jnp.float32(start)
    ar = _cast_arange(ar, ar_dtype, out_dtype)
    x = x_ref[...]
    if x.dtype != jnp.dtype(out_dtype):
        x = x.astype(out_dtype)
    o_ref[...] = x + ar


def _arange_slab_kernel(x_ref, o_ref, *, start, step, lanes, ar_dtype, out_dtype):
    """Elementwise: 1-D x viewed as a (rows, lanes) slab; flat index = r*lanes + c."""
    i = pl.program_id(0)
    j = pl.program_id(1)
    tm, tn = o_ref.shape
    # arange value = start + step * ((i*tm + r) * lanes + j*tn + c), built as a
    # (tm,1) row part + (1,tn) column part -> ~2 VPU adds per element.
    row = (jax.lax.broadcasted_iota(jnp.int32, (tm, 1), 0) + i * tm).astype(jnp.float32)
    base = jnp.float32(start) + jnp.float32(step) * (j * tn).astype(jnp.float32)
    row_part = row * jnp.float32(step * lanes) + base
    col_part = (jax.lax.broadcasted_iota(jnp.int32, (1, tn), 1).astype(jnp.float32)
                * jnp.float32(step))
    ar = _cast_arange(row_part + col_part, ar_dtype, out_dtype)
    x = x_ref[...]
    if x.dtype != jnp.dtype(out_dtype):
        x = x.astype(out_dtype)
    o_ref[...] = x + ar


def _arange_add_bcast(x, start, step, length, ar_dtype, out_dtype):
    rows = x.shape[0]
    itemsize = jnp.dtype(out_dtype).itemsize
    tm, tn = _pick_tiles(rows, length, itemsize)
    grid = (_cdiv(rows, tm), _cdiv(length, tn))
    kernel = functools.partial(_arange_bcast_kernel, start=float(start),
                               step=float(step), ar_dtype=jnp.dtype(ar_dtype),
                               out_dtype=jnp.dtype(out_dtype))
    return pl.pallas_call(
        kernel,
        out_shape=jax.ShapeDtypeStruct((rows, length), out_dtype),
        grid=grid,
        in_specs=[pl.BlockSpec((tm, 1), lambda i, j: (i, 0))],   # constant in j
        out_specs=pl.BlockSpec((tm, tn), lambda i, j: (i, j)),
        compiler_params=pltpu.CompilerParams(
            dimension_semantics=("parallel", "parallel"),
            vmem_limit_bytes=32 * 1024 * 1024),
        cost_estimate=pl.CostEstimate(
            flops=2 * rows * length,
            transcendentals=0,
            bytes_accessed=rows * length * itemsize + rows * x.dtype.itemsize),
    )(x)


def _arange_add_1d(x, start, step, length, ar_dtype, out_dtype):
    # Pick a lane width that divides length so the slab reshape is a free
    # bitcast (no wrapper-side pad/copy of x).
    lanes = next((c for c in (1024, 512, 256, 128) if length % c == 0), None)
    if lanes is None:
        # Ragged length: keep x flat as one (1, length) row; the last lane tile
        # is boundary-clipped by Pallas.
        # TODO(synk): very large ragged 1-D lengths only fill 1/8 sublanes per
        # vreg this way; an in-kernel repack (pl.ANY + manual DMA) would fix it.
        rows_s, lanes = 1, length
    else:
        rows_s = length // lanes
    x2 = x.reshape(rows_s, lanes)       # contiguous row-major -> free
    itemsize = jnp.dtype(out_dtype).itemsize
    tm, tn = _pick_tiles(rows_s, lanes, itemsize)
    grid = (_cdiv(rows_s, tm), _cdiv(lanes, tn))
    kernel = functools.partial(_arange_slab_kernel, start=float(start),
                               step=float(step), lanes=lanes,
                               ar_dtype=jnp.dtype(ar_dtype),
                               out_dtype=jnp.dtype(out_dtype))
    out = pl.pallas_call(
        kernel,
        out_shape=jax.ShapeDtypeStruct((rows_s, lanes), out_dtype),
        grid=grid,
        in_specs=[pl.BlockSpec((tm, tn), lambda i, j: (i, j))],
        out_specs=pl.BlockSpec((tm, tn), lambda i, j: (i, j)),
        compiler_params=pltpu.CompilerParams(
            dimension_semantics=("parallel", "parallel"),
            vmem_limit_bytes=32 * 1024 * 1024),
        cost_estimate=pl.CostEstimate(
            flops=2 * length,
            transcendentals=0,
            bytes_accessed=length * (itemsize + x.dtype.itemsize)),
    )(x2)
    return out.reshape(length)


def arange_add(x, start: float, stop: float, step: float, dtype=jnp.float32,
               *, force_pallas: bool = False):
    """Pallas equivalent of `torch.arange(start, stop, step, dtype=dtype) + x`.

    x is (rows, 1) -> output (rows, L) by broadcasting, or (L,) -> (L,)
    elementwise (matching the PyTorch test cases).
    """
    length = int(math.ceil((stop - start) / step))
    ar_dtype = jnp.dtype(dtype)
    if ar_dtype.itemsize == 8:
        # TODO(synk): 64-bit arange dtypes (torch int64/float64) need jax x64 and
        # aren't supported by Mosaic on TPU; compute in the 32-bit equivalent.
        ar_dtype = (jnp.dtype(jnp.int32) if jnp.issubdtype(ar_dtype, jnp.integer)
                    else jnp.dtype(jnp.float32))
    out_dtype = jnp.result_type(ar_dtype, x.dtype)
    # TODO(synk): the index->f32 FMA loses exactness beyond ~2^24 elements (and
    # for integer arange values beyond 2^24); an int32 index path would be
    # needed for full torch.arange fidelity at those sizes.

    if x.ndim == 1:
        assert x.shape[0] == length, "1-D x must match arange length"
        total = length
    else:
        assert x.ndim == 2 and x.shape[1] == 1, "expected (rows, 1) input"
        total = x.shape[0] * length

    # Tiny outputs: custom-call + grid-prologue overhead dominates; XLA wins.
    if total < _SMALL_ELEMS and not force_pallas:
        ar = (jnp.arange(length, dtype=jnp.float32) * jnp.float32(step)
              + jnp.float32(start)).astype(ar_dtype)
        return (ar + x).astype(out_dtype)

    if x.ndim == 1:
        return _arange_add_1d(x, start, step, length, ar_dtype, out_dtype)
    return _arange_add_bcast(x, start, step, length, ar_dtype, out_dtype)


if __name__ == "__main__":
    key = jax.random.PRNGKey(0)
    k1, k2, k3, k4, k5, k6 = jax.random.split(key, 6)

    # Test '10': x ~ randn(10, 1); arange(0.0, 10.0, 1.0, float32)
    x10 = jax.random.normal(k1, (10, 1), dtype=jnp.float32)
    out10 = jax.block_until_ready(
        arange_add(x10, 0.0, 10.0, 1.0, jnp.float32, force_pallas=True))
    ref10 = jnp.arange(0.0, 10.0, 1.0, dtype=jnp.float32) + x10
    assert out10.shape == ref10.shape == (10, 10)
    assert jnp.allclose(out10, ref10, atol=1e-5), "'10' mismatch vs reference"

    # Test '100': x ~ randn(10, 1); arange(0.0, 10.0, 0.1, float32)
    out100 = jax.block_until_ready(
        arange_add(x10, 0.0, 10.0, 0.1, jnp.float32, force_pallas=True))
    ref100 = jnp.arange(0.0, 10.0, 0.1, dtype=jnp.float32) + x10
    assert out100.shape == ref100.shape == (10, 100)
    assert jnp.allclose(out100, ref100, atol=1e-4), "'100' mismatch vs reference"

    # Test '15': x ~ randn(10); arange(0.0, 15.0, 1.5, float32) (1-D ragged path)
    x15 = jax.random.normal(k2, (10,), dtype=jnp.float32)
    out15 = jax.block_until_ready(
        arange_add(x15, 0.0, 15.0, 1.5, jnp.float32, force_pallas=True))
    ref15 = jnp.arange(0.0, 15.0, 1.5, dtype=jnp.float32) + x15
    assert jnp.allclose(out15, ref15, atol=1e-5), "'15' mismatch vs reference"

    # dtype test 'fp32_int32': int32 arange + float32 x -> float32
    outi = jax.block_until_ready(
        arange_add(x15, 0.0, 10.0, 1.0, jnp.int32, force_pallas=True))
    refi = jnp.arange(0, 10, 1, dtype=jnp.int32) + x15
    assert outi.dtype == jnp.float32
    assert jnp.allclose(outi, refi, atol=1e-5), "fp32_int32 mismatch"

    # dtype test 'int32_int32': int32 arange + int32 x -> int32
    xint = jax.random.randint(k3, (10,), 0, 10, dtype=jnp.int32)
    outii = jax.block_until_ready(
        arange_add(xint, 0.0, 10.0, 1.0, jnp.int32, force_pallas=True))
    refii = jnp.arange(0, 10, 1, dtype=jnp.int32) + xint
    assert outii.dtype == jnp.int32
    assert jnp.array_equal(outii, refii), "int32_int32 mismatch"

    # Medium broadcast case via the default (non-forced) Pallas path.
    xl = jax.random.normal(k4, (64, 1), dtype=jnp.float32)
    outl = jax.block_until_ready(arange_add(xl, 0.0, 2048.0, 1.0, jnp.float32))
    refl = jnp.arange(0.0, 2048.0, 1.0, dtype=jnp.float32) + xl
    assert jnp.allclose(outl, refl, atol=1e-3), "medium broadcast mismatch"

    # Medium 1-D case hitting the free-reshape slab path (65536 % 1024 == 0).
    xs = jax.random.normal(k5, (65536,), dtype=jnp.float32)
    outs1d = jax.block_until_ready(arange_add(xs, 0.0, 65536.0, 1.0, jnp.float32))
    refs1d = jnp.arange(0.0, 65536.0, 1.0, dtype=jnp.float32) + xs
    assert jnp.allclose(outs1d, refs1d, atol=1e-3), "1-D slab mismatch"

    # Case exercising the megacore row-split + boundary-clipped last block.
    xc = jax.random.normal(k6, (520, 1), dtype=jnp.float32)
    outc = jax.block_until_ready(arange_add(xc, 0.0, 1100.0, 1.0, jnp.float32))
    refc = jnp.arange(0.0, 1100.0, 1.0, dtype=jnp.float32) + xc
    assert jnp.allclose(outc, refc, atol=1e-3), "clipped-block mismatch"

    # Tiny-shape fallback path (no force_pallas) stays correct.
    outs = jax.block_until_ready(arange_add(x10, 0.0, 10.0, 1.0, jnp.float32))
    assert jnp.allclose(outs, ref10, atol=1e-5), "fallback mismatch"

    print("KERNEL_OK")
</pallas_src>

<mosaic_0001>
module attributes {stable_mosaic.version = 11 : i64} {
  func.func @_arange_bcast_kernel(%arg0: i32, %arg1: i32, %arg2: memref<10x1xf32, #tpu.memory_space<vmem>>, %arg3: memref<10x10xf32, #tpu.memory_space<vmem>>) attributes {dimension_semantics = [#tpu.dimension_semantics<parallel>, #tpu.dimension_semantics<parallel>], iteration_bounds = array<i64: 1, 1>, scalar_prefetch = 0 : i64, scratch_operands = 0 : i64, tpu.core_type = #tpu.core_type<tc>, window_params = [{transform_indices = @transform_0, window_bounds = array<i64: 10, 1>}, {transform_indices = @transform_1, window_bounds = array<i64: 10, 10>}]} {
    %0 = tpu.iota {dimensions = array<i32: 1>} : vector<1x10xi32>
    %c10_i32 = arith.constant 10 : i32
    %1 = arith.muli %arg1, %c10_i32 : i32
    %2 = vector.broadcast %1 : i32 to vector<1x10xi32>
    %3 = arith.addi %0, %2 : vector<1x10xi32>
    %4 = arith.sitofp %3 : vector<1x10xi32> to vector<1x10xf32>
    %cst = arith.constant 1.000000e+00 : f32
    %5 = vector.broadcast %cst : f32 to vector<1x10xf32>
    %6 = arith.mulf %4, %5 : vector<1x10xf32>
    %cst_0 = arith.constant 0.000000e+00 : f32
    %7 = vector.broadcast %cst_0 : f32 to vector<1x10xf32>
    %8 = arith.addf %6, %7 : vector<1x10xf32>
    %c0 = arith.constant 0 : index
    %c0_1 = arith.constant 0 : index
    %9 = vector.load %arg2[%c0, %c0_1] : memref<10x1xf32, #tpu.memory_space<vmem>>, vector<10x1xf32>
    %10 = vector.broadcast %9 : vector<10x1xf32> to vector<10x10xf32>
    %11 = vector.broadcast %8 : vector<1x10xf32> to vector<10x10xf32>
    %12 = arith.addf %10, %11 : vector<10x10xf32>
    %c0_2 = arith.constant 0 : index
    %c0_3 = arith.constant 0 : index
    %13 = vector.load %arg3[%c0_2, %c0_3] : memref<10x10xf32, #tpu.memory_space<vmem>>, vector<10x10xf32>
    tpu.vector_store %arg3[%c0_2, %c0_3], %12 {strides = array<i32>} : memref<10x10xf32, #tpu.memory_space<vmem>>, vector<10x10xf32>,
    return
  }
  func.func @transform_0(%arg0: i32, %arg1: i32) -> (i32, i32) {
    %c0_i32 = arith.constant 0 : i32
    %c0_i32_0 = arith.constant 0 : i32
    return %arg0, %c0_i32 : i32, i32
  }
  func.func @transform_1(%arg0: i32, %arg1: i32) -> (i32, i32) {
    %c0_i32 = arith.constant 0 : i32
    return %arg0, %arg1 : i32, i32
  }
}

</mosaic_0001>

<bundles_post_ra>
// kernel: tpu_custom_call.1
= control target key start
LH: loop header
LB: loop body
LE: loop exit
PB: predicated region body
PF: predicated region fallthrough
CT: control target
= control target key end

     0   :  { %v83_v1 = vmov 0   ;;  %s106_s0 = inlined_call_operand.vmem [shape: f32[10,1], index: 0, kind: input, shape index: {}]   ;;  %s107_s1 = inlined_call_operand.hbm [shape: f32[10,10], index: 1, kind: output, shape index: {}]  }
   0x1   :  { %v16_v0 = vld [vmem:[%s106_s0] sm:$0xff]  ;;  %56 = vset.pattern.permute.xlu0 %v83_v1 }
   0x2   :  { %6 = vsyncpa [#allocation3], 0  ;;  %20 = vperm.xlu0 %56, %v16_v0   ;;  %v17_v2 = vld [vmem:[%s106_s0 + $0x8] sm:$0x3]  ;;  %v9_v3 = vlaneseq  ;;  %vm30_vm0 = vcmask 80896   ;;  %s84_s10 = smov [#allocation2]  }
   0x3   :  { %s38_s11 = sshll.u32 %s84_s10, 4  ;;  %s40_s14 = sshll.u32 %s107_s1, 4  ;;  %vm32_vm1 = vcmask 74752   ;;  %s39_s11 = int_to_ptr.vmem [resolvable:$true] %s38_s11  ;;  %s41_s14 = int_to_ptr.hbm [resolvable:$true] %s40_s14 }
   0x4   :  { %v10_v4 = vand.u32 127, %v9_v3  ;;  %s85_s0 = smov 128   ;;  %s86_s15 = smov 8  }
   0x6   :  { %v14_v5 = vcvt.s32.f32 %v10_v4 }
   0xa   :  { %25 = vperm.xlu0 %56, %v17_v2  }
  0x74   :  { %v21_v6 = vpop.permute.xlu0 %20 }
  0x75   :  { %v28_v7 = vadd.f32 %v21_v6, %v14_v5 }
  0x77   :  { %31 = vst.msk [vmem:[#allocation2] sm:$0xff] %vm30_vm0, %v28_v7 }
  0x7c   :  { %v26_v8 = vpop.permute.xlu0 %25 }
  0x7d   :  { %v29_v9 = vadd.f32 %v26_v8, %v14_v5 }
  0x7f   :  { %33 = vst.msk [vmem:[#allocation2 + $0x8] sm:$0x3] %vm32_vm1, %v29_v9 }
  0x80   :  { %46 = dma.vmem_to_hbm [thread:$0]  %s39_s11, 256, %s41_s14, [#allocation3], %s85_s0, %s85_s0, %s86_s15  }
  0x81   :  { %81 = dma.done.wait [#allocation3], 256  }
  0x82   :  { %82 = vsyncadd [#allocation3], 4294967040 }
  0x83   :  { %51 = vsyncpa [#allocation3], 1 }

</bundles_post_ra>
